<compile_context>
chip_gen: v7x
topology: tpu7x:2x2x1
jax: 0.10.0
libtpu: 0.0.40
codegen_flags: <defaults>
</compile_context>

<pallas_src>
import functools

import jax
import jax.numpy as jnp
from jax import lax
from jax.experimental import pallas as pl
from jax.experimental.pallas import tpu as pltpu


# ----------------------------------------------------------------------------
# VMEM scoped limit: default scoped limits (16/32 MiB) are below what large
# tiles + f32 accumulators want; cap at 3/4 of physical so the same config is
# safe on v7x (64 MiB physical VMEM).
# ----------------------------------------------------------------------------
def _vmem_limit_bytes():
    try:
        cap = int(pltpu.get_tpu_info().vmem_capacity_bytes)
        return min(96 * 1024 * 1024, (cap * 3) // 4)
    except Exception:
        return 48 * 1024 * 1024


_VMEM_LIMIT = _vmem_limit_bytes()


def _cparams(dims):
    return pltpu.CompilerParams(dimension_semantics=dims,
                                vmem_limit_bytes=_VMEM_LIMIT)


def _pick_tile(dim, target, aligns):
    """Largest multiple of an alignment in `aligns` (tried in order: 256-first
    for MXU-friendly lane tiles on v6e/v7x, 16-first for bf16 row tiles) that
    divides `dim` and is <= target; `dim` itself when dim <= target
    (equal-to-full is always BlockSpec-legal)."""
    if dim <= target:
        return dim
    for a in aligns:
        t = (target // a) * a
        while t >= a:
            if dim % t == 0:
                return t
            t -= a
    # TODO(synk): masked remainder tiles for awkward dims; full-dim fallback is
    # correct but can create one very large tile.
    return dim


# ----------------------------------------------------------------------------
# Generic tiled matmul + bias (used for the fused QKV projection).
# grid = (M/tm, N/tn, K/tk); f32 VMEM accumulator; K is the reduction axis.
# ----------------------------------------------------------------------------
def _matmul_bias_kernel(x_ref, w_ref, b_ref, o_ref, acc_ref):
    k = pl.program_id(2)

    @pl.when(k == 0)
    def _():
        acc_ref[...] = jnp.zeros_like(acc_ref)

    acc_ref[...] += jnp.dot(x_ref[...].astype(jnp.bfloat16),
                            w_ref[...].astype(jnp.bfloat16),
                            preferred_element_type=jnp.float32)

    @pl.when(k == pl.num_programs(2) - 1)
    def _():
        o_ref[...] = (acc_ref[...] + b_ref[...]).astype(o_ref.dtype)


def dense_bias(x, w, b, *, out_dtype=jnp.bfloat16, tm=512, tn=768, tk=768):
    M, K = x.shape
    _, N = w.shape
    tm = _pick_tile(M, tm, (16, 8))
    tn = _pick_tile(N, tn, (256, 128))
    tk = _pick_tile(K, tk, (256, 128))
    grid = (M // tm, N // tn, K // tk)
    return pl.pallas_call(
        _matmul_bias_kernel,
        grid=grid,
        in_specs=[pl.BlockSpec((tm, tk), lambda i, j, k: (i, k)),
                  pl.BlockSpec((tk, tn), lambda i, j, k: (k, j)),
                  pl.BlockSpec((1, tn), lambda i, j, k: (0, j))],
        out_specs=pl.BlockSpec((tm, tn), lambda i, j, k: (i, j)),
        out_shape=jax.ShapeDtypeStruct((M, N), out_dtype),
        scratch_shapes=[pltpu.VMEM((tm, tn), jnp.float32)],
        compiler_params=_cparams(("parallel", "parallel", "arbitrary")),
        cost_estimate=pl.CostEstimate(
            flops=int(2 * M * N * K), transcendentals=0,
            bytes_accessed=int(x.size * 2 + w.size * 2 + M * N * 2)),
    )(x, w, b.reshape(1, N))


# ----------------------------------------------------------------------------
# Tiled matmul with K reduction, epilogue = bias + residual + LayerNorm
# (eps=1e-12).  Used for the attention output projection (full K=H matmul on a
# lane-dense (B*S, H) attention output — no per-head K=DH matmuls).
# ----------------------------------------------------------------------------
def _matmul_res_ln_kernel(x_ref, w_ref, b_ref, res_ref, g_ref, beta_ref,
                          o_ref, acc_ref):
    k = pl.program_id(1)

    @pl.when(k == 0)
    def _():
        acc_ref[...] = jnp.zeros_like(acc_ref)

    acc_ref[...] += jnp.dot(x_ref[...].astype(jnp.bfloat16),
                            w_ref[...].astype(jnp.bfloat16),
                            preferred_element_type=jnp.float32)

    @pl.when(k == pl.num_programs(1) - 1)
    def _():
        y = acc_ref[...] + b_ref[...] + res_ref[...].astype(jnp.float32)
        mu = jnp.mean(y, axis=-1, keepdims=True)
        var = jnp.mean(jnp.square(y - mu), axis=-1, keepdims=True)
        o_ref[...] = ((y - mu) * lax.rsqrt(var + 1e-12) * g_ref[...]
                      + beta_ref[...]).astype(o_ref.dtype)


def dense_res_ln(x, w, b, res, g, beta, *, out_dtype=jnp.bfloat16,
                 tm=512, tk=768):
    M, K = x.shape
    _, N = w.shape
    tm = _pick_tile(M, tm, (16, 8))
    tk = _pick_tile(K, tk, (256, 128))
    grid = (M // tm, K // tk)
    return pl.pallas_call(
        _matmul_res_ln_kernel,
        grid=grid,
        in_specs=[pl.BlockSpec((tm, tk), lambda i, k: (i, k)),
                  pl.BlockSpec((tk, N), lambda i, k: (k, 0)),
                  pl.BlockSpec((1, N), lambda i, k: (0, 0)),
                  pl.BlockSpec((tm, N), lambda i, k: (i, 0)),
                  pl.BlockSpec((1, N), lambda i, k: (0, 0)),
                  pl.BlockSpec((1, N), lambda i, k: (0, 0))],
        out_specs=pl.BlockSpec((tm, N), lambda i, k: (i, 0)),
        out_shape=jax.ShapeDtypeStruct((M, N), out_dtype),
        scratch_shapes=[pltpu.VMEM((tm, N), jnp.float32)],
        compiler_params=_cparams(("parallel", "arbitrary")),
        cost_estimate=pl.CostEstimate(
            flops=int(2 * M * N * K), transcendentals=0,
            bytes_accessed=int(x.size * 2 + w.size * 2 + 2 * M * N * 2)),
    )(x, w, b.reshape(1, N), res, g.reshape(1, N), beta.reshape(1, N))


# ----------------------------------------------------------------------------
# Fused FFN: GELU(x @ W1 + b1) @ W2 + b2 + residual, then LayerNorm — all in
# one kernel.  grid = (M/tm, FFN/tf); the (tm, tf) hidden tile lives only in
# VMEM/vregs; FFN2 accumulates into the f32 scratch (the FFN intermediate
# never hits HBM).  The residual is the kernel input x itself.
# ----------------------------------------------------------------------------
def _ffn_kernel(x_ref, w1_ref, b1_ref, w2_ref, b2_ref, g_ref, beta_ref,
                o_ref, acc_ref):
    f = pl.program_id(1)

    @pl.when(f == 0)
    def _():
        acc_ref[...] = jnp.zeros_like(acc_ref)

    h = jnp.dot(x_ref[...].astype(jnp.bfloat16),
                w1_ref[...].astype(jnp.bfloat16),
                preferred_element_type=jnp.float32) + b1_ref[...]
    h = jax.nn.gelu(h, approximate=True)
    acc_ref[...] += jnp.dot(h.astype(jnp.bfloat16),
                            w2_ref[...].astype(jnp.bfloat16),
                            preferred_element_type=jnp.float32)

    @pl.when(f == pl.num_programs(1) - 1)
    def _():
        y = acc_ref[...] + b2_ref[...] + x_ref[...].astype(jnp.float32)
        mu = jnp.mean(y, axis=-1, keepdims=True)
        var = jnp.mean(jnp.square(y - mu), axis=-1, keepdims=True)
        o_ref[...] = ((y - mu) * lax.rsqrt(var + 1e-12) * g_ref[...]
                      + beta_ref[...]).astype(o_ref.dtype)


def ffn_fused(x, w1, b1, w2, b2, g, beta, *, out_dtype=jnp.bfloat16,
              tm=512, tf=512):
    M, H = x.shape
    FFN = w1.shape[1]
    tm = _pick_tile(M, tm, (16, 8))
    tf = _pick_tile(FFN, tf, (256, 128))
    grid = (M // tm, FFN // tf)
    return pl.pallas_call(
        _ffn_kernel,
        grid=grid,
        in_specs=[pl.BlockSpec((tm, H), lambda i, f: (i, 0)),
                  pl.BlockSpec((H, tf), lambda i, f: (0, f)),
                  pl.BlockSpec((1, tf), lambda i, f: (0, f)),
                  pl.BlockSpec((tf, H), lambda i, f: (f, 0)),
                  pl.BlockSpec((1, H), lambda i, f: (0, 0)),
                  pl.BlockSpec((1, H), lambda i, f: (0, 0)),
                  pl.BlockSpec((1, H), lambda i, f: (0, 0))],
        out_specs=pl.BlockSpec((tm, H), lambda i, f: (i, 0)),
        out_shape=jax.ShapeDtypeStruct((M, H), out_dtype),
        scratch_shapes=[pltpu.VMEM((tm, H), jnp.float32)],
        compiler_params=_cparams(("parallel", "arbitrary")),
        cost_estimate=pl.CostEstimate(
            flops=int(4 * M * H * FFN), transcendentals=int(M * FFN),
            bytes_accessed=int(x.size * 2 + (w1.size + w2.size) * 2
                               + 2 * M * H * 2)),
    )(x, w1, b1.reshape(1, FFN), w2, b2.reshape(1, H),
      g.reshape(1, H), beta.reshape(1, H))


# ----------------------------------------------------------------------------
# Embedding LayerNorm over rows.
# ----------------------------------------------------------------------------
def _layernorm_kernel(x_ref, g_ref, b_ref, o_ref):
    x = x_ref[...].astype(jnp.float32)
    mu = jnp.mean(x, axis=-1, keepdims=True)
    var = jnp.mean(jnp.square(x - mu), axis=-1, keepdims=True)
    o_ref[...] = ((x - mu) * lax.rsqrt(var + 1e-12) * g_ref[...]
                  + b_ref[...]).astype(o_ref.dtype)


def layernorm_rows(x, g, b, *, out_dtype=jnp.bfloat16, tm=512):
    M, H = x.shape
    tm = _pick_tile(M, tm, (16, 8))
    return pl.pallas_call(
        _layernorm_kernel,
        grid=(M // tm,),
        in_specs=[pl.BlockSpec((tm, H), lambda i: (i, 0)),
                  pl.BlockSpec((1, H), lambda i: (0, 0)),
                  pl.BlockSpec((1, H), lambda i: (0, 0))],
        out_specs=pl.BlockSpec((tm, H), lambda i: (i, 0)),
        out_shape=jax.ShapeDtypeStruct((M, H), out_dtype),
        compiler_params=_cparams(("parallel",)),
    )(x, g.reshape(1, H), b.reshape(1, H))


# ----------------------------------------------------------------------------
# Multi-head self-attention.  One batch element per grid step; the kernel reads
# the packed (S, 3H) QKV row-block straight from the QKV projection output
# (no XLA head-split transpose) and writes a lane-dense (S, H) merged-head
# output.  Key-padding mask additive; scale folded into q; softmax uses the
# EUP approx reciprocal.
# ----------------------------------------------------------------------------
def _mha_kernel(qkv_ref, mask_ref, o_ref, *, num_heads, head_dim, scale):
    H = num_heads * head_dim
    mask_add = (mask_ref[0] - 1.0) * 1e9                       # (1, S)
    qkv = qkv_ref[...]                                         # (S, 3H) bf16
    outs = []
    for h in range(num_heads):
        q = (qkv[:, h * head_dim:(h + 1) * head_dim].astype(jnp.float32)
             * scale).astype(jnp.bfloat16)
        k = qkv[:, H + h * head_dim:H + (h + 1) * head_dim]
        v = qkv[:, 2 * H + h * head_dim:2 * H + (h + 1) * head_dim]
        s = lax.dot_general(q, k, (((1,), (1,)), ((), ())),
                            preferred_element_type=jnp.float32)        # (S, S)
        s = s + mask_add
        m = jnp.max(s, axis=-1, keepdims=True)
        p = jnp.exp(s - m)
        l = jnp.sum(p, axis=-1, keepdims=True)
        p = p * pl.reciprocal(l, approx=True)
        outs.append(jnp.dot(p.astype(jnp.bfloat16), v,
                            preferred_element_type=jnp.float32))
    o_ref[...] = jnp.concatenate(outs, axis=-1).astype(o_ref.dtype)


def multihead_attention(qkv, mask, *, batch, seq, num_heads):
    M, threeH = qkv.shape
    H = threeH // 3
    DH = H // num_heads
    mask3 = mask.astype(jnp.float32).reshape(batch, 1, seq)
    return pl.pallas_call(
        functools.partial(_mha_kernel, num_heads=num_heads, head_dim=DH,
                          scale=1.0 / (DH ** 0.5)),
        grid=(batch,),
        in_specs=[pl.BlockSpec((seq, threeH), lambda b: (b, 0)),
                  pl.BlockSpec((1, 1, seq), lambda b: (b, 0, 0))],
        out_specs=pl.BlockSpec((seq, H), lambda b: (b, 0)),
        out_shape=jax.ShapeDtypeStruct((M, H), jnp.bfloat16),
        compiler_params=_cparams(("parallel",)),
        cost_estimate=pl.CostEstimate(
            flops=int(4 * batch * num_heads * seq * seq * DH),
            transcendentals=int(batch * num_heads * seq * seq),
            bytes_accessed=int(qkv.size * 2 + M * H * 2)),
    )(qkv, mask3)


# ----------------------------------------------------------------------------
# Tag projection with fused dropout (p=0.1).  Deterministic counter-based hash
# (logical shifts, integer threshold compare, bf16 where-select).  Output is
# padded to 128 lanes for lane-dense stores; sliced to T downstream.
# ----------------------------------------------------------------------------
def _dropout_matmul_kernel(seed_ref, x_ref, w_ref, b_ref, o_ref, acc_ref,
                           *, rate, tm, tk, apply_dropout):
    kk = pl.program_id(1)

    @pl.when(kk == 0)
    def _():
        acc_ref[...] = jnp.zeros_like(acc_ref)

    x = x_ref[...].astype(jnp.bfloat16)
    if apply_dropout:
        i = pl.program_id(0)
        row = lax.broadcasted_iota(jnp.int32, x.shape, 0) + i * tm
        col = lax.broadcasted_iota(jnp.int32, x.shape, 1) + kk * tk
        h = seed_ref[0] * 1000003 + row * 19349663 + col * 83492791
        h = h ^ lax.shift_right_logical(h, jnp.int32(13))
        h = h * jnp.int32(1274126177)
        h = h ^ lax.shift_right_logical(h, jnp.int32(16))
        thresh = jnp.int32(int(rate * float(1 << 31)))
        keep = (h & jnp.int32(0x7FFFFFFF)) >= thresh
        x = jnp.where(keep, x * (1.0 / (1.0 - rate)), 0.0).astype(jnp.bfloat16)

    acc_ref[...] += jnp.dot(x, w_ref[...].astype(jnp.bfloat16),
                            preferred_element_type=jnp.float32)

    @pl.when(kk == pl.num_programs(1) - 1)
    def _():
        o_ref[...] = acc_ref[...] + b_ref[...]


def dropout_tag_projection(x, w_pad, b_pad, seed, *, rate=0.1, training=True,
                           tm=512, tk=768):
    M, K = x.shape
    _, NP = w_pad.shape
    tm = _pick_tile(M, tm, (16, 8))
    tk = _pick_tile(K, tk, (256, 128))
    grid = (M // tm, K // tk)
    kern = functools.partial(_dropout_matmul_kernel, rate=rate, tm=tm, tk=tk,
                             apply_dropout=bool(training) and rate > 0.0)
    return pl.pallas_call(
        kern,
        grid=grid,
        in_specs=[pl.BlockSpec(memory_space=pltpu.MemorySpace.SMEM),
                  pl.BlockSpec((tm, tk), lambda i, k: (i, k)),
                  pl.BlockSpec((tk, NP), lambda i, k: (k, 0)),
                  pl.BlockSpec((1, NP), lambda i, k: (0, 0))],
        out_specs=pl.BlockSpec((tm, NP), lambda i, k: (i, 0)),
        out_shape=jax.ShapeDtypeStruct((M, NP), jnp.float32),
        scratch_shapes=[pltpu.VMEM((tm, NP), jnp.float32)],
        compiler_params=_cparams(("parallel", "arbitrary")),
    )(jnp.asarray([seed], dtype=jnp.int32), x, w_pad, b_pad.reshape(1, NP))


# ----------------------------------------------------------------------------
# CRF negative log-likelihood (torchcrf semantics, batch_first=True).
# One batch element per grid step (parallel axis).  The gold transition score
# uses a tiny (S-1,T)@(T,T) matmul instead of a rank-4 one-hot gather, and the
# forward recursion is a lax.fori_loop over positions (serial by nature).
# Emissions arrive lane-padded (B, S, 128); only the first T lanes are used.
# Requires mask[:, 0] == 1 (torchcrf requirement).
# ----------------------------------------------------------------------------
def _crf_nll_kernel(emis_ref, tags_ref, mask_ref, start_ref, end_ref,
                    trans_ref, trans_t_ref, llh_ref, *, num_tags, seq_len):
    T = num_tags
    S = seq_len
    emis = emis_ref[0][:, :T]          # (S, T) f32
    tags = tags_ref[0]                 # (S, 1) int32
    maskf = mask_ref[0]                # (S, 1) f32 {0,1}
    start = start_ref[...]             # (1, T)
    end = end_ref[...]                 # (1, T)
    trans = trans_ref[...]             # (T, T)  [prev, cur]
    trans_t = trans_t_ref[...]         # (T, T)  [cur, prev]

    tag_iota = lax.broadcasted_iota(jnp.int32, (S, T), 1)
    onehot = (tags == tag_iota).astype(jnp.float32)                    # (S, T)

    # ---- numerator: gold path score -------------------------------------
    e_gold = jnp.sum(onehot * emis, axis=-1, keepdims=True)            # (S, 1)
    start_gold = jnp.sum(onehot[0:1, :] * start, axis=-1,
                         keepdims=True)                                # (1, 1)
    # trans[tags[s-1], tags[s]] via one-hot @ trans (tiny MXU matmul)
    m_prev = jnp.dot(onehot[:-1, :], trans,
                     preferred_element_type=jnp.float32)               # (S-1,T)
    trans_gold = jnp.sum(m_prev * onehot[1:, :], axis=-1,
                         keepdims=True)                                # (S-1,1)
    step_sum = jnp.sum((trans_gold + e_gold[1:, :]) * maskf[1:, :],
                       axis=0, keepdims=True)                          # (1, 1)

    mask_i32 = (maskf > 0.5).astype(jnp.int32)
    len_b = jnp.sum(mask_i32, axis=0, keepdims=True)                   # (1, 1)
    pos = lax.broadcasted_iota(jnp.int32, (S, 1), 0)
    is_last = (pos == (len_b - 1)).astype(jnp.float32)                 # (S, 1)
    last_oh = jnp.sum(onehot * is_last, axis=0, keepdims=True)         # (1, T)
    end_gold = jnp.sum(last_oh * end, axis=-1, keepdims=True)          # (1, 1)

    numerator = start_gold + e_gold[0:1, :] + step_sum + end_gold      # (1, 1)

    # ---- denominator: forward algorithm (log partition) ------------------
    score0 = start + emis[0:1, :]                                      # (1, T)

    def body(i, score):
        emit_i = emis_ref[0, pl.ds(i, 1), :][:, :T]                    # (1, T)
        mask_i = mask_ref[0, pl.ds(i, 1), :]                           # (1, 1)
        # x[0, cur, prev] = score[prev] + trans[prev, cur] + emit_i[cur]
        x = score[:, None, :] + trans_t[None, :, :] + emit_i[:, :, None]
        m = jnp.max(x, axis=-1)                                        # (1, T)
        nxt = m + jnp.log(jnp.sum(jnp.exp(x - m[:, :, None]), axis=-1))
        return jnp.where(mask_i > 0.0, nxt, score)

    score = lax.fori_loop(1, S, body, score0)
    score = score + end                                                # (1, T)
    m = jnp.max(score, axis=-1, keepdims=True)
    denom = m + jnp.log(jnp.sum(jnp.exp(score - m), axis=-1,
                                keepdims=True))                        # (1, 1)

    llh_ref[...] = (numerator - denom).reshape(1, 1, 1)


def crf_neg_log_likelihood_mean(emis_pad, tags, mask, start, end, trans,
                                num_tags):
    B, S, NP = emis_pad.shape
    T = num_tags
    llh = pl.pallas_call(
        functools.partial(_crf_nll_kernel, num_tags=T, seq_len=S),
        grid=(B,),
        in_specs=[pl.BlockSpec((1, S, NP), lambda b: (b, 0, 0)),
                  pl.BlockSpec((1, S, 1), lambda b: (b, 0, 0)),
                  pl.BlockSpec((1, S, 1), lambda b: (b, 0, 0)),
                  pl.BlockSpec((1, T), lambda b: (0, 0)),
                  pl.BlockSpec((1, T), lambda b: (0, 0)),
                  pl.BlockSpec((T, T), lambda b: (0, 0)),
                  pl.BlockSpec((T, T), lambda b: (0, 0))],
        out_specs=pl.BlockSpec((1, 1, 1), lambda b: (b, 0, 0)),
        out_shape=jax.ShapeDtypeStruct((B, 1, 1), jnp.float32),
        compiler_params=_cparams(("parallel",)),
    )(emis_pad.astype(jnp.float32),
      tags.astype(jnp.int32).reshape(B, S, 1),
      mask.astype(jnp.float32).reshape(B, S, 1),
      start.reshape(1, T), end.reshape(1, T), trans, trans.T)
    # reduction='mean' over batch, negated: loss = -llh.mean()
    return -jnp.mean(llh)


# ----------------------------------------------------------------------------
# BERT stand-in encoder (frozen, deterministic synthetic weights).
# TODO(synk): the stand-in omits BERT's internal attention/hidden dropouts.
# ----------------------------------------------------------------------------
def bert_encoder(params, ids, attn_mask):
    B, S = ids.shape
    H = params["word_emb"].shape[1]
    # Embedding table lookup is a data-dependent gather; kept as XLA glue.
    # TODO(synk): could become a Pallas DMA-gather kernel with scalar prefetch.
    x = params["word_emb"][ids] + params["pos_emb"][None, :S, :]
    x = layernorm_rows(x.reshape(B * S, H),
                       params["ln_emb_g"], params["ln_emb_b"])       # bf16

    for layer in params["layers"]:
        NH = layer["num_heads"]
        # fused QKV projection: one (H, 3H) matmul, full-K reduction
        qkv = dense_bias(x, layer["wqkv"], layer["bqkv"])            # (B*S,3H)
        # attention reads (S, 3H) row blocks directly; lane-dense (B*S,H) out
        attn = multihead_attention(qkv, attn_mask, batch=B, seq=S,
                                   num_heads=NH)                     # (B*S, H)
        # output projection: full K=H matmul + bias + residual + LayerNorm
        x = dense_res_ln(attn, layer["wo"], layer["bo"], x,
                         layer["ln1_g"], layer["ln1_b"])             # (B*S, H)
        # fused FFN1 + GELU + FFN2 + residual + LayerNorm (no HBM intermediate)
        x = ffn_fused(x, layer["w1"], layer["b1"], layer["w2"], layer["b2"],
                      layer["ln2_g"], layer["ln2_b"])                # (B*S, H)
    return x  # (B*S, H) bf16


# ----------------------------------------------------------------------------
# BERT_CRF.forward equivalent
# ----------------------------------------------------------------------------
def bert_crf_forward(params, sentence, tags, mask, is_test=False,
                     training=True, dropout_seed=0):
    B, S = sentence.shape
    T = params["tag_size"]

    enc = bert_encoder(params, sentence, mask)           # _get_features: bert
    feats_pad = dropout_tag_projection(                  # dropout+linear fused
        enc, params["linear_w_pad"], params["linear_b_pad"],
        dropout_seed, rate=0.1, training=training)       # (B*S, 128) f32
    emis_pad = feats_pad.reshape(B, S, -1)               # lane-padded emissions

    if not is_test:
        return crf_neg_log_likelihood_mean(
            emis_pad, tags, mask,
            params["crf_start"], params["crf_end"], params["crf_trans"], T)
    # TODO(synk): CRF Viterbi decode (is_test=True branch) not implemented.
    raise NotImplementedError("decode path not implemented")


# ----------------------------------------------------------------------------
# Deterministic parameter init (bf16 matmul weights, f32 norms/biases/CRF)
# ----------------------------------------------------------------------------
def init_params(key, vocab, H, NH, FFN, L, max_pos, T, n_pad=128):
    keys = jax.random.split(key, 8 + L)

    def norm(k, shape, scale=0.02):
        return scale * jax.random.normal(k, shape, dtype=jnp.float32)

    lw = norm(keys[2], (H, T))
    lw_pad = jnp.zeros((H, n_pad), jnp.float32).at[:, :T].set(lw)

    params = {
        "word_emb": norm(keys[0], (vocab, H)),
        "pos_emb": norm(keys[1], (max_pos, H)),
        "ln_emb_g": jnp.ones((H,), jnp.float32),
        "ln_emb_b": jnp.zeros((H,), jnp.float32),
        "linear_w_pad": lw_pad.astype(jnp.bfloat16),   # lane-dense tag proj
        "linear_b_pad": jnp.zeros((n_pad,), jnp.float32),
        "tag_size": T,
        # torchcrf init: uniform(-0.1, 0.1)
        "crf_start": jax.random.uniform(keys[3], (T,), jnp.float32, -0.1, 0.1),
        "crf_end": jax.random.uniform(keys[4], (T,), jnp.float32, -0.1, 0.1),
        "crf_trans": jax.random.uniform(keys[5], (T, T), jnp.float32, -0.1, 0.1),
        "layers": [],
    }
    for l in range(L):
        lk = jax.random.split(keys[8 + l], 6)
        wq, wk, wv = norm(lk[0], (H, H)), norm(lk[1], (H, H)), norm(lk[2], (H, H))
        params["layers"].append({
            "num_heads": NH,
            "wqkv": jnp.concatenate([wq, wk, wv], axis=1).astype(jnp.bfloat16),
            "bqkv": jnp.zeros((3 * H,), jnp.float32),
            "wo": norm(lk[3], (H, H)).astype(jnp.bfloat16),
            "bo": jnp.zeros((H,), jnp.float32),
            "w1": norm(lk[4], (H, FFN)).astype(jnp.bfloat16),
            "b1": jnp.zeros((FFN,), jnp.float32),
            "w2": norm(lk[5], (FFN, H)).astype(jnp.bfloat16),
            "b2": jnp.zeros((H,), jnp.float32),
            "ln1_g": jnp.ones((H,), jnp.float32),
            "ln1_b": jnp.zeros((H,), jnp.float32),
            "ln2_g": jnp.ones((H,), jnp.float32),
            "ln2_b": jnp.zeros((H,), jnp.float32),
        })
    return params


if __name__ == "__main__":
    tag_to_ix = {"O": 0, "B-PER": 1, "I-PER": 2, "B-LOC": 3, "I-LOC": 4}
    T = len(tag_to_ix)
    B, S, H = 2, 8, 32           # small embedding_dim stand-in for 768
    VOCAB, NH, FFN, L = 100, 4, 64, 2

    key = jax.random.PRNGKey(0)
    kp, ks, kt = jax.random.split(key, 3)
    params = init_params(kp, vocab=VOCAB, H=H, NH=NH, FFN=FFN, L=L,
                         max_pos=S, T=T)

    sentence = jax.random.randint(ks, (B, S), 0, VOCAB, dtype=jnp.int32)
    tags = jax.random.randint(kt, (B, S), 0, T, dtype=jnp.int32)
    lengths = jnp.array([S, 5], dtype=jnp.int32)
    mask = (lax.broadcasted_iota(jnp.int32, (B, S), 1)
            < lengths[:, None]).astype(jnp.float32)
    assert bool(jnp.all(mask[:, 0] > 0)), "torchcrf requires mask[:, 0] == 1"

    loss = bert_crf_forward(params, sentence, tags, mask,
                            is_test=False, training=True, dropout_seed=0)
    loss = jax.block_until_ready(loss)
    assert jnp.isfinite(loss), "non-finite CRF loss"
    print("KERNEL_OK")
</pallas_src>

<mosaic_0001>
module attributes {stable_mosaic.version = 11 : i64} {
  func.func @_layernorm_kernel(%arg0: i32, %arg1: memref<16x32xf32, #tpu.memory_space<vmem>>, %arg2: memref<1x32xf32, #tpu.memory_space<vmem>>, %arg3: memref<1x32xf32, #tpu.memory_space<vmem>>, %arg4: memref<16x32xbf16, #tpu.memory_space<vmem>>) attributes {dimension_semantics = [#tpu.dimension_semantics<parallel>], iteration_bounds = array<i64: 1>, scalar_prefetch = 0 : i64, scratch_operands = 0 : i64, tpu.core_type = #tpu.core_type<tc>, window_params = [{transform_indices = @transform_0, window_bounds = array<i64: 16, 32>}, {pipeline_mode = #tpu.pipeline_mode<synchronous>, transform_indices = @transform_1, window_bounds = array<i64: 1, 32>}, {pipeline_mode = #tpu.pipeline_mode<synchronous>, transform_indices = @transform_2, window_bounds = array<i64: 1, 32>}, {transform_indices = @transform_3, window_bounds = array<i64: 16, 32>}]} {
    %c0 = arith.constant 0 : index
    %c0_0 = arith.constant 0 : index
    %0 = vector.load %arg1[%c0, %c0_0] : memref<16x32xf32, #tpu.memory_space<vmem>>, vector<16x32xf32>
    %cst = arith.constant dense<0.000000e+00> : vector<16xf32>
    %1 = vector.multi_reduction <add>, %0, %cst [1] : vector<16x32xf32> to vector<16xf32>
    %2 = vector.shape_cast %1 : vector<16xf32> to vector<16x1xf32>
    %cst_1 = arith.constant 3.200000e+01 : f32
    %3 = vector.broadcast %cst_1 : f32 to vector<16x1xf32>
    %4 = arith.divf %2, %3 : vector<16x1xf32>
    %5 = vector.broadcast %4 : vector<16x1xf32> to vector<16x32xf32>
    %6 = arith.subf %0, %5 : vector<16x32xf32>
    %7 = arith.mulf %6, %6 : vector<16x32xf32>
    %cst_2 = arith.constant dense<0.000000e+00> : vector<16xf32>
    %8 = vector.multi_reduction <add>, %7, %cst_2 [1] : vector<16x32xf32> to vector<16xf32>
    %9 = vector.shape_cast %8 : vector<16xf32> to vector<16x1xf32>
    %cst_3 = arith.constant 3.200000e+01 : f32
    %10 = vector.broadcast %cst_3 : f32 to vector<16x1xf32>
    %11 = arith.divf %9, %10 : vector<16x1xf32>
    %12 = vector.broadcast %4 : vector<16x1xf32> to vector<16x32xf32>
    %13 = arith.subf %0, %12 : vector<16x32xf32>
    %cst_4 = arith.constant 9.99999996E-13 : f32
    %14 = vector.broadcast %cst_4 : f32 to vector<16x1xf32>
    %15 = arith.addf %11, %14 : vector<16x1xf32>
    %16 = math.rsqrt %15 : vector<16x1xf32>
    %17 = vector.broadcast %16 : vector<16x1xf32> to vector<16x32xf32>
    %18 = arith.mulf %13, %17 : vector<16x32xf32>
    %c0_5 = arith.constant 0 : index
    %c0_6 = arith.constant 0 : index
    %19 = vector.load %arg2[%c0_5, %c0_6] : memref<1x32xf32, #tpu.memory_space<vmem>>, vector<1x32xf32>
    %20 = vector.broadcast %19 : vector<1x32xf32> to vector<16x32xf32>
    %21 = arith.mulf %18, %20 : vector<16x32xf32>
    %c0_7 = arith.constant 0 : index
    %c0_8 = arith.constant 0 : index
    %22 = vector.load %arg3[%c0_7, %c0_8] : memref<1x32xf32, #tpu.memory_space<vmem>>, vector<1x32xf32>
    %23 = vector.broadcast %22 : vector<1x32xf32> to vector<16x32xf32>
    %24 = arith.addf %21, %23 : vector<16x32xf32>
    %25 = arith.truncf %24 : vector<16x32xf32> to vector<16x32xbf16>
    %c0_9 = arith.constant 0 : index
    %c0_10 = arith.constant 0 : index
    %26 = vector.load %arg4[%c0_9, %c0_10] : memref<16x32xbf16, #tpu.memory_space<vmem>>, vector<16x32xbf16>
    tpu.vector_store %arg4[%c0_9, %c0_10], %25 {strides = array<i32>} : memref<16x32xbf16, #tpu.memory_space<vmem>>, vector<16x32xbf16>,
    return
  }
  func.func @transform_0(%arg0: i32) -> (i32, i32) {
    %c0_i32 = arith.constant 0 : i32
    %c0_i32_0 = arith.constant 0 : i32
    return %arg0, %c0_i32 : i32, i32
  }
  func.func @transform_1(%arg0: i32) -> (i32, i32) {
    %c0_i32 = arith.constant 0 : i32
    %c0_i32_0 = arith.constant 0 : i32
    %c0_i32_1 = arith.constant 0 : i32
    return %c0_i32, %c0_i32_0 : i32, i32
  }
  func.func @transform_2(%arg0: i32) -> (i32, i32) {
    %c0_i32 = arith.constant 0 : i32
    %c0_i32_0 = arith.constant 0 : i32
    %c0_i32_1 = arith.constant 0 : i32
    return %c0_i32, %c0_i32_0 : i32, i32
  }
  func.func @transform_3(%arg0: i32) -> (i32, i32) {
    %c0_i32 = arith.constant 0 : i32
    %c0_i32_0 = arith.constant 0 : i32
    return %arg0, %c0_i32 : i32, i32
  }
}

</mosaic_0001>

<bundles_post_ra>
// kernel: tpu_custom_call.1
= control target key start
LH: loop header
LB: loop body
LE: loop exit
PB: predicated region body
PF: predicated region fallthrough
CT: control target
= control target key end

     0   :  { %8 = vsyncpa [#allocation3], 0  ;;  %s229_s0 = inlined_call_operand.hbm [shape: f32[16,32], index: 0, kind: input, shape index: {}]   ;;  %s230_s1 = inlined_call_operand.vmem [shape: f32[1,32], index: 1, kind: input, shape index: {}]   ;;  %s231_s2 = inlined_call_operand.vmem [shape: f32[1,32], index: 2, kind: input, shape index: {}]   ;;  %s232_s3 = inlined_call_operand.hbm [shape: bf16[16,32], index: 3, kind: output, shape index: {}]  }
   0x1   :  { %9 = vsyncpa [#allocation4], 0  ;;  %s169_s12 = smov [#allocation2]   ;;  %s121_s16 = scalar_lea.hbm %s229_s0, 256 }
   0x2   :  { %s15_s13 = sshll.u32 %s169_s12, 4  ;;  %p122_p0 = scmp.ne.s32.totalorder %s229_s0, %s121_s16  ;;  %s16_s13 = int_to_ptr.vmem [resolvable:$true] %s15_s13 }
   0x3   :  { %p125_p1 = scmp.lt.u32.totalorder %s121_s16, %s229_s0 }
   0x5   :  { %p127_p2 = pnand %p125_p1, %p122_p0 }
   0x7   :  { %130 = shalt.err (!%p127_p2)
}
   0x8   :  { %s131_s21 = scalar_lea.vmem %s16_s13, 256  ;;  %p136_p4 = scmp.lt.s32.totalorder %s16_s13, %s16_s13 }
   0x9   :  { %p132_p3 = scmp.ne.s32.totalorder %s16_s13, %s131_s21  ;;  %p137_p5 = scmp.lt.s32.totalorder %s131_s21, %s131_s21 }
   0xb   :  { %p138_p6 = por %p137_p5, %p136_p4 }
   0xd   :  { %p139_p7 = pnand %p138_p6, %p132_p3 }
   0xf   :  { %142 = shalt.err (!%p139_p7)
}
  0x10   :  { %s170_s22 = smov 128   ;;  %s171_s23 = smov 8  }
  0x11   :  { %21 = dma.hbm_to_vmem [thread:$0]  %s229_s0, 256, %s16_s13, [#allocation3], %s170_s22, %s170_s22, %s171_s23  }
  0x12   :  { %165 = dma.done.wait [#allocation3], 256  }
  0x13   :  { %166 = vsyncadd [#allocation3], 4294967040  ;;  %vm31_vm0 = vcmask 261120   ;;  %v29_v0 = vld [vmem:[#allocation2] sm:$0xff]  ;;  %v30_v1 = vld [vmem:[#allocation2 + $0x8] sm:$0xff]  ;;  %vm85_vm1 = vcmask 257024  }
  0x14   :  { %v32_v2 = vsel %vm31_vm0, %v29_v0, 0.0  ;;  %v35_v3 = vsel %vm31_vm0, %v30_v1, 0.0  ;;  %v105_v21 = vld [vmem:[%s230_s1] ss:$0 sm:$0xff]  ;;  %s172_s29 = smov [#allocation5]  }
  0x15   :  { %33 = vadd.xlane.f32.xlu0 %v32_v2  ;;  %v106_v23 = vld [vmem:[%s231_s2] ss:$0 sm:$0xff]  ;;  %s93_s30 = sshll.u32 %s172_s29, 4  ;;  %s94_s30 = int_to_ptr.vmem [resolvable:$true] %s93_s30 }
  0x16   :  { %s143_s1 = scalar_lea.vmem %s94_s30, 128  ;;  %p148_p9 = scmp.lt.s32.totalorder %s94_s30, %s94_s30 }
  0x17   :  { %p144_p8 = scmp.ne.s32.totalorder %s94_s30, %s143_s1  ;;  %p149_p10 = scmp.lt.s32.totalorder %s143_s1, %s143_s1 }
  0x19   :  { %36 = vadd.xlane.f32.xlu0 %v35_v3  ;;  %p150_p11 = por %p149_p10, %p148_p9 }
  0x1b   :  { %p151_p12 = pnand %p150_p11, %p144_p8 }
  0xa2   :  { %v34_v4 = vpop.xlane.xlu0 %33 }
  0xa3   :  { %v39_v5 = vmul.f32 0.03125, %v34_v4 }
  0xa5   :  { %v41_v6 = vsub.f32 %v29_v0, %v39_v5 }
  0xa6   :  { %v37_v7 = vpop.xlane.xlu0 %36 }
  0xa7   :  { %v40_v8 = vmul.f32 0.03125, %v37_v7  ;;  %v43_v9 = vmul.f32 %v41_v6, %v41_v6 }
  0xa9   :  { %v42_v10 = vsub.f32 %v30_v1, %v40_v8  ;;  %v45_v11 = vsel %vm31_vm0, %v43_v9, 0.0 }
  0xaa   :  { %46 = vadd.xlane.f32.xlu1 %v45_v11 }
  0xab   :  { %v44_v12 = vmul.f32 %v42_v10, %v42_v10 }
  0xad   :  { %v48_v13 = vsel %vm31_vm0, %v44_v12, 0.0 }
  0xae   :  { %49 = vadd.xlane.f32.xlu1 %v48_v13 }
 0x137   :  { %v47_v14 = vpop.xlane.xlu1 %46 }
 0x138   :  { %v51_v15 = vmul.f32 0.03125, %v47_v14 }
 0x13a   :  { %v53_v16 = vadd.f32 1e-12, %v51_v15 }
 0x13b   :  { %v50_v17 = vpop.xlane.xlu1 %49 }
 0x13c   :  { %117 = vrsqrt.f32 %v53_v16  ;;  %v52_v18 = vmul.f32 0.03125, %v50_v17 }
 0x13e   :  { %v54_v19 = vadd.f32 1e-12, %v52_v18 }
 0x140   :  { %119 = vrsqrt.f32 %v54_v19 }
 0x146   :  { %v118_v20 = vpop.eup %117 }
 0x147   :  { %v57_v22 = vmul.f32 %v118_v20, %v41_v6 }
 0x149   :  { %v66_v24 = vmul.f32 %v105_v21, %v57_v22 }
 0x14a   :  { %v120_v25 = vpop.eup %119 }
 0x14b   :  { %v58_v26 = vmul.f32 %v120_v25, %v42_v10  ;;  %v75_v27 = vadd.f32 %v106_v23, %v66_v24 }
 0x14d   :  { %v67_v28 = vmul.f32 %v105_v21, %v58_v26  ;;  %v109_v29 = vpack.c.bf16 %v75_v27, %v75_v27 }
 0x14f   :  { %v76_v30 = vadd.f32 %v106_v23, %v67_v28  ;;  %86 = vst.msk [vmem:[#allocation5] sm:$0xf] %vm85_vm1, %v109_v29 }
 0x151   :  { %v110_v31 = vpack.c.bf16 %v76_v30, %v76_v30 }
 0x153   :  { %87 = vst.msk [vmem:[#allocation5 + $0x4] sm:$0xf] %vm85_vm1, %v110_v31 }
 0x154   :  { %154 = shalt.err (!%p151_p12)
}
 0x155   :  { %s155_s5 = scalar_lea.hbm %s232_s3, 128 }
 0x156   :  { %p156_p13 = scmp.ne.s32.totalorder %s232_s3, %s155_s5  ;;  %p159_p0 = scmp.lt.u32.totalorder %s155_s5, %s232_s3 }
 0x158   :  { %p161_p1 = pnand %p159_p0, %p156_p13 }
 0x15a   :  { %164 = shalt.err (!%p161_p1)
}
 0x15b   :  { %s173_s10 = smov 64   ;;  %s174_s11 = smov 4  }
 0x15c   :  { %99 = dma.vmem_to_hbm [thread:$0]  %s94_s30, 128, %s232_s3, [#allocation4], %s173_s10, %s173_s10, %s174_s11  }
 0x15d   :  { %167 = dma.done.wait [#allocation4], 128  }
 0x15e   :  { %168 = vsyncadd [#allocation4], 4294967168 }
 0x15f   :  { %103 = vsyncpa [#allocation3], 1 }
 0x160   :  { %104 = vsyncpa [#allocation4], 1 }

</bundles_post_ra>
